<compile_context>
chip_gen: v7x
topology: tpu7x:2x2x1
jax: 0.10.0
libtpu: 0.0.40
codegen_flags: <defaults>
</compile_context>

<pallas_src>
import functools
import math

import jax
import jax.numpy as jnp
from jax import lax
from jax.experimental import pallas as pl
from jax.experimental.pallas import tpu as pltpu


def build_pe_cw(d_model: int, w: int) -> jax.Array:
    """(C, W) table: row 2k = sin(j * div[k]), row 2k+1 = cos(j * div[k])."""
    assert d_model % 2 == 0, "d_model must be even (same constraint as the torch code)"
    j = jnp.arange(w, dtype=jnp.float32)                                      # (W,)
    div_term = jnp.exp(
        jnp.arange(0.0, d_model, 2.0, dtype=jnp.float32)
        * -(math.log(10000.0) / d_model)
    )                                                                         # (C/2,)
    angles = div_term[:, None] * j[None, :]                                   # (C/2, W)
    pe = jnp.stack([jnp.sin(angles), jnp.cos(angles)], axis=1)                # (C/2, 2, W)
    return pe.reshape(d_model, w)                                             # (C, W)


def _pe2d_kernel(seed_ref, x_ref, pe_ref, o_ref, *, p: float, training: bool, hw: int):
    cdim, tcol = x_ref.shape          # block is (C, TCOL) after squeezing the batch dim
    w = pe_ref.shape[-1]
    reps = tcol // w

    # Broadcast the (C, W) table over H inside the kernel (lane-axis repeat);
    # avoids fetching an H-times-larger pe from HBM every tile.
    pe = pe_ref[...]
    pe_row = pe if reps == 1 else jnp.tile(pe, (1, reps))                     # (C, TCOL)

    y = x_ref[...] + pe_row

    if training and p >= 1.0:
        # nn.Dropout(p=1.0) zeroes everything.
        y = jnp.zeros_like(y)
    elif training and p > 0.0:
        # Inverted dropout: keep w.p. (1-p), scale kept values by 1/(1-p).
        # keep-mask = murmur3-fmix32 hash of (seed, global flat element index):
        # stateless, reproducible, identical on hardware and in interpret mode.
        i = pl.program_id(0).astype(jnp.uint32)      # batch index
        j = pl.program_id(1).astype(jnp.uint32)      # column-tile index
        seed_u = seed_ref[0].astype(jnp.uint32)

        row = lax.broadcasted_iota(jnp.int32, (cdim, tcol), 0).astype(jnp.uint32)
        col = lax.broadcasted_iota(jnp.int32, (cdim, tcol), 1).astype(jnp.uint32)
        # globally-unique element id (mod 2**32)
        flat = (i * jnp.uint32(cdim) + row) * jnp.uint32(hw) \
            + j * jnp.uint32(tcol) + col

        z = flat ^ (seed_u * jnp.uint32(0x9E3779B9) + jnp.uint32(0x7F4A7C15))
        z = z ^ (z >> 16)                              # murmur3 fmix32 avalanche
        z = z * jnp.uint32(0x85EBCA6B)
        z = z ^ (z >> 13)
        z = z * jnp.uint32(0xC2B2AE35)
        z = z ^ (z >> 16)

        # Integer threshold compare on the top 24 bits (no float convert / multiply).
        thresh = jnp.int32(int(round(p * float(1 << 24))))
        keep = (z >> 8).astype(jnp.int32) >= thresh
        scale = jnp.asarray(1.0 / (1.0 - p), dtype=y.dtype)
        y = jnp.where(keep, y * scale, jnp.zeros_like(y))

    o_ref[...] = y.astype(o_ref.dtype)


def _vmem_capacity_bytes() -> int:
    """Per-generation VMEM capacity (v7x only has 64 MiB/TensorCore)."""
    try:
        if jax.devices()[0].platform == "tpu":
            cap = int(getattr(pltpu.get_tpu_info(), "vmem_capacity_bytes", 0))
            if cap > 0:
                return cap
    except Exception:
        pass
    return 64 * 1024 * 1024   # conservative fallback (v7x per-core VMEM)


def _choose_col_tile(hw: int, w: int, c: int, itemsize: int, max_block_bytes: int) -> int:
    """Largest column tile that divides H*W, is a multiple of W (so the in-kernel
    pe repeat is a whole number of rows) and of 128 (unmasked lane-dense vld/vst),
    and fits the per-block VMEM budget."""
    if c * hw * itemsize <= max_block_bytes:
        return hw
    best = None
    t = w
    while t < hw:
        if hw % t == 0 and t % 128 == 0 and c * t * itemsize <= max_block_bytes:
            best = t
        t += w
    return best if best is not None else hw   # fallback: full row (always correct)


def positional_encoding_2d(x: jax.Array,
                           *,
                           dropout_prob: float = 0.1,
                           training: bool = False,
                           seed: int = 0) -> jax.Array:
    """Forward pass of PositionalEncoding2D.  x: (N, C=d_model, H, W)."""
    assert x.ndim == 4, "expected NCHW input"
    assert 0.0 <= dropout_prob <= 1.0, "dropout_prob must be in [0, 1]"
    n, c, h, w = x.shape
    hw = h * w
    itemsize = jnp.dtype(x.dtype).itemsize

    # Lane-dense view (free reshape of a row-major NCHW array).
    x3 = x.reshape(n, c, hw)
    # Compute in the input dtype (bf16 stays bf16 on v6e/v7x; f32 demo stays exact).
    pe_cw = build_pe_cw(c, w).astype(x.dtype)                   # (C, W) only

    vmem_cap = _vmem_capacity_bytes()
    # x + out double-buffered plus pe + kernel temporaries -> keep each block small.
    tcol = _choose_col_tile(hw, w, c, itemsize, max_block_bytes=vmem_cap // 16)
    ncol = hw // tcol
    block_bytes = c * tcol * itemsize
    vmem_limit = int(min(max(12 * block_bytes, 32 * 1024 * 1024), vmem_cap))

    kernel = functools.partial(_pe2d_kernel, p=float(dropout_prob),
                               training=bool(training), hw=hw)
    seed_arr = jnp.array([seed], dtype=jnp.int32)

    grid_spec = pltpu.PrefetchScalarGridSpec(
        num_scalar_prefetch=1,                                  # seed -> SMEM
        grid=(n, ncol),
        in_specs=[
            pl.BlockSpec((None, c, tcol), lambda i, j, sref: (i, 0, j)),   # x tile
            pl.BlockSpec((c, w), lambda i, j, sref: (0, 0)),               # pe table
        ],
        out_specs=pl.BlockSpec((None, c, tcol), lambda i, j, sref: (i, 0, j)),
    )

    out3 = pl.pallas_call(
        kernel,
        out_shape=jax.ShapeDtypeStruct((n, c, hw), x.dtype),
        grid_spec=grid_spec,
        compiler_params=pltpu.CompilerParams(
            dimension_semantics=("parallel", "parallel"),   # elementwise: shardable on v7x
            vmem_limit_bytes=vmem_limit,
        ),
    )(seed_arr, x3, pe_cw)
    return out3.reshape(n, c, h, w)


if __name__ == "__main__":
    key = jax.random.PRNGKey(0)
    N, C, H, W = 2, 4, 16, 16            # C = d_model
    x = jax.random.normal(key, (N, C, H, W), dtype=jnp.float32)

    pe_cw = build_pe_cw(C, W)                                   # (C, W) float32
    ref = x + pe_cw[None, :, None, :]                           # == x + pe[:, :, :H, :W]

    # Eval mode: dropout is the identity.
    out_eval = jax.block_until_ready(
        positional_encoding_2d(x, dropout_prob=0.1, training=False))
    assert out_eval.shape == x.shape and out_eval.dtype == x.dtype
    assert jnp.allclose(out_eval, ref, atol=1e-5, rtol=1e-5), "eval-mode mismatch"

    # Training mode: inverted dropout (zero w.p. p, else scale by 1/(1-p)).
    p = 0.1
    out_train = jax.block_until_ready(
        positional_encoding_2d(x, dropout_prob=p, training=True, seed=123))
    assert out_train.shape == x.shape and out_train.dtype == x.dtype
    kept = out_train != 0.0
    n_drop = int(jnp.sum(~kept))
    assert 0 < n_drop < out_train.size, "dropout mask looks degenerate"
    assert jnp.allclose(jnp.where(kept, out_train, 0.0),
                        jnp.where(kept, ref * (1.0 / (1.0 - p)), 0.0),
                        atol=1e-5, rtol=1e-5), "training-mode dropout scaling mismatch"

    print("KERNEL_OK")
</pallas_src>

<mosaic_0001>
module attributes {stable_mosaic.version = 11 : i64} {
  func.func @_pe2d_kernel(%arg0: i32, %arg1: i32, %arg2: memref<1xi32, #tpu.memory_space<smem>>, %arg3: memref<1x4x256xf32, #tpu.memory_space<vmem>>, %arg4: memref<4x16xf32, #tpu.memory_space<vmem>>, %arg5: memref<1x4x256xf32, #tpu.memory_space<vmem>>) attributes {dimension_semantics = [#tpu.dimension_semantics<parallel>, #tpu.dimension_semantics<parallel>], iteration_bounds = array<i64: 2, 1>, scalar_prefetch = 1 : i64, scratch_operands = 0 : i64, tpu.core_type = #tpu.core_type<tc>, window_params = [{transform_indices = @transform_0, window_bounds = array<i64: 1, 4, 256>}, {pipeline_mode = #tpu.pipeline_mode<synchronous>, transform_indices = @transform_1, window_bounds = array<i64: 4, 16>}, {transform_indices = @transform_2, window_bounds = array<i64: 1, 4, 256>}]} {
    %c0 = arith.constant 0 : index
    %c0_0 = arith.constant 0 : index
    %0 = vector.load %arg4[%c0, %c0_0] : memref<4x16xf32, #tpu.memory_space<vmem>>, vector<4x16xf32>
    %1 = tpu.concatenate %0, %0, %0, %0, %0, %0, %0, %0, %0, %0, %0, %0, %0, %0, %0, %0 in 1 : vector<4x16xf32>, vector<4x16xf32>, vector<4x16xf32>, vector<4x16xf32>, vector<4x16xf32>, vector<4x16xf32>, vector<4x16xf32>, vector<4x16xf32>, vector<4x16xf32>, vector<4x16xf32>, vector<4x16xf32>, vector<4x16xf32>, vector<4x16xf32>, vector<4x16xf32>, vector<4x16xf32>, vector<4x16xf32> -> vector<4x256xf32>
    %c0_1 = arith.constant 0 : index
    %c0_2 = arith.constant 0 : index
    %c0_3 = arith.constant 0 : index
    %2 = vector.load %arg3[%c0_1, %c0_2, %c0_3] : memref<1x4x256xf32, #tpu.memory_space<vmem>>, vector<1x4x256xf32>
    %3 = vector.shape_cast %2 : vector<1x4x256xf32> to vector<4x256xf32>
    %4 = arith.addf %3, %1 : vector<4x256xf32>
    %c0_4 = arith.constant 0 : index
    %c0_5 = arith.constant 0 : index
    %c0_6 = arith.constant 0 : index
    %5 = vector.load %arg5[%c0_4, %c0_5, %c0_6] : memref<1x4x256xf32, #tpu.memory_space<vmem>>, vector<1x4x256xf32>
    %6 = vector.shape_cast %5 : vector<1x4x256xf32> to vector<4x256xf32>
    %7 = vector.shape_cast %4 : vector<4x256xf32> to vector<1x4x256xf32>
    tpu.vector_store %arg5[%c0_4, %c0_5, %c0_6], %7 {strides = array<i32>} : memref<1x4x256xf32, #tpu.memory_space<vmem>>, vector<1x4x256xf32>,
    return
  }
  func.func @transform_0(%arg0: i32, %arg1: i32, %arg2: memref<1xi32, #tpu.memory_space<smem>>) -> (i32, i32, i32) {
    %c0_i32 = arith.constant 0 : i32
    %c0_i32_0 = arith.constant 0 : i32
    return %arg0, %c0_i32, %arg1 : i32, i32, i32
  }
  func.func @transform_1(%arg0: i32, %arg1: i32, %arg2: memref<1xi32, #tpu.memory_space<smem>>) -> (i32, i32) {
    %c0_i32 = arith.constant 0 : i32
    %c0_i32_0 = arith.constant 0 : i32
    %c0_i32_1 = arith.constant 0 : i32
    return %c0_i32, %c0_i32_0 : i32, i32
  }
  func.func @transform_2(%arg0: i32, %arg1: i32, %arg2: memref<1xi32, #tpu.memory_space<smem>>) -> (i32, i32, i32) {
    %c0_i32 = arith.constant 0 : i32
    %c0_i32_0 = arith.constant 0 : i32
    return %arg0, %c0_i32, %arg1 : i32, i32, i32
  }
}

</mosaic_0001>

<bundles_post_ra>
// kernel: tpu_custom_call.1
= control target key start
LH: loop header
LB: loop body
LE: loop exit
PB: predicated region body
PF: predicated region fallthrough
CT: control target
= control target key end

     0   :  { %9 = vsyncpa [#allocation5], 0  ;;  %s737_s0 = inlined_call_operand.<no memory space> [shape: s32[1], index: 0, kind: input, shape index: {}]   ;;  %s738_s1 = inlined_call_operand.hbm [shape: f32[2,4,256], index: 1, kind: input, shape index: {}]   ;;  %s739_s2 = inlined_call_operand.vmem [shape: f32[4,16], index: 2, kind: input, shape index: {}]   ;;  %s740_s3 = inlined_call_operand.hbm [shape: f32[2,4,256], index: 3, kind: output, shape index: {}]  }
   0x1   :  { %11 = vsyncpa [#allocation5 + $0x1], 0 }
   0x2   :  { %12 = vsyncpa [#allocation6], 0 }
   0x3   :  { %14 = vsyncpa [#allocation6 + $0x1], 0  ;;  %s555_s12 = smov 0   ;;  %s557_s13 = smov 0  }
   0x4   :  { %s559_s14 = smov 0   ;;  %s561_s0 = smov 0  }
   0x5   :  { %s563_s15 = smov 0   ;;  %s565_s16 = smov 0  }
   0x6 LB: > { %s326_s17 = sadd.s32 4294967295, %s524_s16   ;;  %s327_s18 = sadd.s32 4294967294, %s524_s16   ;;  %s524_s16 = sphi %s565_s16, %s20_s16   ;;  %s520_s15 = sphi %s563_s15, %s756_s15   ;;  %s516_s0 = sphi %s561_s0, %s755_s0   ;;  %s512_s14 = sphi %s559_s14, %s754_s14   ;;  %s508_s13 = sphi %s557_s13, %s753_s13   ;;  %s504_s12 = sphi %s555_s12, %s752_s12  }
   0x7   : > { %s32_s19 = sadd.s32 1, %s520_s15  ;;  %s41_s20 = sadd.s32 1, %s512_s14 }
   0x8   : > { %p34_p0 = scmp.ge.s32.totalorder %s32_s19, 2  ;;  %p48_p1 = scmp.ne.s32.totalorder %s512_s14, %s508_s13 }
   0x9   : > { %p49_p2 = scmp.eq.s32.totalorder %s524_s16, 0  ;;  %p54_p3 = scmp.ne.s32.totalorder %s508_s13, %s504_s12 }
   0xa   : > { %s758_s19 = smov (%p34_p0, %s32_s19), 0  ;;  %p55_p5 = scmp.eq.s32.totalorder %s326_s17, 0 }
   0xb   : > { %p596_p4 = por %p49_p2, %p48_p1  ;;  %s36_s22 = ssub.s32 %s520_s15, %s758_s19 }
   0xc   : > { %p101_p6 = scmp.eq.s32.totalorder %s326_s17, 1  ;;  %p39_p7 = scmp.eq.s32.totalorder %s36_s22, 0 }
   0xd   : > { %p602_p8 = por %p55_p5, %p54_p3  ;;  %p107_p10 = scmp.eq.s32.totalorder %s327_s18, 1 }
   0xe   : > { %p606_p9 = por %p101_p6, %p48_p1  ;;  %p355_p13 = scmp.lt.s32.totalorder %s524_s16, 2 }
   0xf   : > { %s611_s25 = scalar_select %p39_p7, %s512_s14, %s41_s20  }
  0x10   : > { %s744_s24 = scalar_select %p606_p9, 1, 0 }
  0x11   : > { %p613_p11 = por %p107_p10, %p54_p3  ;;  %s130_s27 = sand.u32 1, %s512_s14  }
  0x12   : > { %s330_s28 = sshll.u32 %s130_s27, 3  ;;  %s341_s29 = sshll.u32 %s520_s15, 7 }
  0x13   : > { %s745_s26 = scalar_select %p613_p11, 1, 0 }
  0x14   : > { %s624_s5 = scalar_lea.hbm %s738_s1, %s341_s29  ;;  %s134_s6 = scalar_lea.vmem [#allocation4], %s330_s28 }
  0x15   : > { %s144_s7 = sshll.u32 %s134_s6, 4  ;;  %p630_p0 = pnand %p355_p13, %p596_p4  ;;  %s626_s7 = int_to_ptr.vmem [resolvable:$true] %s144_s7 }
  0x16   : > { %s131_s9 = scalar_lea.sflag [#allocation5], %s130_s27  ;;  %s412_s10 = scalar_lea.hbm %s624_s5, 128 }
  0x17   : > { %p413_p3 = scmp.ne.s32.totalorder %s624_s5, %s412_s10  ;;  %p414_p5 = pneg %p630_p0 }
  0x18   : > { %s417_s18 = scalar_lea.hbm %s738_s1, 256  ;;  %p418_p4 = scmp.lt.u32.totalorder %s624_s5, %s738_s1 }
  0x19   : > { %p415_p6 = pnand %p414_p5, %p413_p3  ;;  %p419_p10 = scmp.lt.u32.totalorder %s417_s18, %s412_s10 }
  0x1a   : > { %p421_p12 = scmp.lt.u32.totalorder %s412_s10, %s624_s5 }
  0x1b   : > { %p416_p7 = pneg %p415_p6  ;;  %p420_p13 = por %p419_p10, %p418_p4 }
  0x1d   : > { %p422_p1 = por %p421_p12, %p420_p13 }
  0x1f   : > { %p423_p2 = pnand %p422_p1, %p416_p7 }
  0x21   : > { %426 = shalt.err (!%p423_p2)
}
  0x22   : > { %s427_s22 = scalar_lea.vmem %s626_s7, 128  ;;  %s526_s27 = smov [#allocation4]  }
  0x23   : > { %p428_p3 = scmp.ne.s32.totalorder %s626_s7, %s427_s22  ;;  %s432_s28 = sshll.u32 %s526_s27, 4  ;;  %s433_s28 = int_to_ptr.vmem [resolvable:$false] %s432_s28 }
  0x24   : > { %s434_s29 = scalar_lea.vmem %s433_s28, 256  ;;  %p435_p9 = scmp.lt.s32.totalorder %s626_s7, %s433_s28 }
  0x25   : > { %p430_p6 = pnand %p428_p3, %p414_p5  ;;  %p436_p4 = scmp.lt.s32.totalorder %s434_s29, %s427_s22 }
  0x27   : > { %p431_p11 = pneg %p430_p6  ;;  %p437_p10 = por %p436_p4, %p435_p9 }
  0x29   : > { %p438_p12 = pnand %p437_p10, %p431_p11 }
  0x2b   : > { %441 = shalt.err (!%p438_p12)
}
  0x2c   : > { %350 = dma.hbm_to_vmem [thread:$0]  (!%p630_p0), %s624_s5, 128, %s626_s7, %s131_s9  }
  0x2d   : > { %p747_p1 = scmp.lt.s32.totalorder %s524_s16, 3  ;;  %p748_p2 = scmp.ge.s32.totalorder %s524_s16, 1 }
  0x2f   : > { %p150_p5 = pnand %p748_p2, %p747_p1 }
  0x30   : > { %s666_s30 = sand.u32 (!%p150_p5), 1, %s508_s13  }
  0x31   : > { %153 = sbr.rel (%p150_p5) target bundleno = 204 (0xcc), region = 28  ;;  %s334_s4 = sshll.u32 (!%p150_p5), %s666_s30, 3 }
  0x32   : > { %s156_s6 = scalar_lea.sflag (!%p150_p5), [#allocation5], %s666_s30  ;;  %s672_s8 = scalar_lea.vmem (!%p150_p5), [#allocation4], %s334_s4 }
  0x38   : > { %495 = dma.done.wait (%p602_p8), %s156_s6, 128  }
  0x39   : > { %497 = vsyncadd (%p602_p8), %s156_s6, 4294967168  ;;  %v182_v0 = vld [vmem:[%s739_s2] sm:$0xf]  ;;  %s527_s9 = smov 16   ;;  %s528_s10 = smov 48   ;;  %vm205_vm0 = vcmask 130048  }
  0x3a   : > { %184 = vrot.lane.b32.xlu0 %v182_v0, %s527_s9  ;;  %190 = vrot.lane.b32.xlu1 %v182_v0, %s528_s10  ;;  %s529_s11 = smov 32   ;;  %s530_s17 = smov 64   ;;  %vm207_vm1 = vcmask 261120   ;;  %vm209_vm2 = vcmask 392192   ;;  %vm211_vm3 = vcmask 523264   ;;  %vm213_vm4 = vcmask 654336  }
  0x3b   : > { %s531_s18 = smov 80   ;;  %s532_s20 = smov 96   ;;  %vm215_vm5 = vcmask 785408   ;;  %vm217_vm6 = vcmask 916480   ;;  %v219_v14 = vld [vmem:[%s672_s8] sm:$0xff] }
  0x3c   : > { %s533_s21 = smov 112   ;;  %s342_s23 = sshll.u32 %s516_s0, 7 }
  0x3d   : > { %s179_s22 = scalar_lea.vmem [#allocation7], %s334_s4  ;;  %s688_s6 = scalar_lea.hbm %s740_s3, %s342_s23 }
  0x3e   : > { %187 = vrot.lane.b32.xlu0 %v182_v0, %s529_s11  ;;  %193 = vrot.lane.b32.xlu1 %v182_v0, %s530_s17  ;;  %s242_s27 = sshll.u32 %s179_s22, 4  ;;  %s226_s5 = scalar_lea.sflag [#allocation6], %s666_s30  ;;  %s690_s27 = int_to_ptr.vmem [resolvable:$true] %s242_s27 }
  0x3f   : > { %s442_s8 = scalar_lea.vmem %s690_s27, 128  ;;  %p749_p9 = scmp.ne.s32.totalorder %s744_s24, 0 }
  0x40   : > { %p443_p8 = scmp.ne.s32.totalorder %s690_s27, %s442_s8  ;;  %s534_s0 = smov [#allocation7]  }
  0x41   : > { %s446_s4 = sshll.u32 %s534_s0, 4  ;;  %s447_s4 = int_to_ptr.vmem [resolvable:$false] %s446_s4 }
  0x42   : > { %196 = vrot.lane.b32.xlu0 %v182_v0, %s531_s18  ;;  %199 = vrot.lane.b32.xlu1 %v182_v0, %s532_s20  ;;  %p444_p11 = pnand %p443_p8, %p749_p9  ;;  %s448_s7 = scalar_lea.vmem %s447_s4, 256 }
  0x43   : > { %p449_p7 = scmp.lt.s32.totalorder %s690_s27, %s447_s4  ;;  %p450_p13 = scmp.lt.s32.totalorder %s448_s7, %s442_s8 }
  0x44   : > { %p445_p0 = pneg %p444_p11 }
  0x45   : > { %p451_p3 = por %p450_p13, %p449_p7 }
  0x46   : > { %202 = vrot.lane.b32.xlu0 %v182_v0, %s533_s21 }
  0x47   : > { %p452_p6 = pnand %p451_p3, %p445_p0 }
  0xac   : > { %v185_v1 = vpop.permute.xlu0 %184  ;;  %v191_v2 = vpop.permute.xlu1 %190 }
  0xad   : > { %v206_v3 = vsel %vm205_vm0, %v182_v0, %v185_v1 }
  0xb0   : > { %v188_v4 = vpop.permute.xlu0 %187  ;;  %v194_v5 = vpop.permute.xlu1 %193 }
  0xb1   : > { %v208_v6 = vsel %vm207_vm1, %v206_v3, %v188_v4 }
  0xb2   : > { %v210_v7 = vsel %vm209_vm2, %v208_v6, %v191_v2 }
  0xb3   : > { %v212_v8 = vsel %vm211_vm3, %v210_v7, %v194_v5 }
  0xb4   : > { %v197_v9 = vpop.permute.xlu0 %196  ;;  %v200_v11 = vpop.permute.xlu1 %199 }
  0xb5   : > { %v214_v10 = vsel %vm213_vm4, %v212_v8, %v197_v9 }
  0xb6   : > { %v216_v12 = vsel %vm215_vm5, %v214_v10, %v200_v11 }
  0xb8   : > { %v203_v13 = vpop.permute.xlu0 %202 }
  0xb9   : > { %v218_v15 = vsel %vm217_vm6, %v216_v12, %v203_v13 }
  0xba   : > { %v221_v16 = vcombine.low %v218_v15, %v218_v15 }
  0xbc   : > { %v223_v17 = vadd.f32 %v221_v16, %v219_v14 }
  0xbe   : > { %224 = vst [vmem:[%s179_s22] sm:$0xff] %v223_v17 }
  0xbf   : > { %455 = shalt.err (!%p452_p6)
}
  0xc0   : > { %s456_s30 = scalar_lea.hbm %s688_s6, 128  ;;  %s460_s11 = scalar_lea.hbm %s740_s3, 256 }
  0xc1   : > { %p457_p4 = scmp.ne.s32.totalorder %s688_s6, %s456_s30  ;;  %p461_p1 = scmp.lt.u32.totalorder %s688_s6, %s740_s3 }
  0xc2   : > { %p462_p2 = scmp.lt.u32.totalorder %s460_s11, %s456_s30  ;;  %p464_p8 = scmp.lt.u32.totalorder %s456_s30, %s688_s6 }
  0xc3   : > { %p458_p10 = pnand %p457_p4, %p749_p9 }
  0xc4   : > { %p463_p5 = por %p462_p2, %p461_p1 }
  0xc5   : > { %p459_p12 = pneg %p458_p10 }
  0xc6   : > { %p465_p11 = por %p464_p8, %p463_p5 }
  0xc8   : > { %p466_p0 = pnand %p465_p11, %p459_p12 }
  0xca   : > { %469 = shalt.err (!%p466_p0)
}
  0xcb   : > { %345 = dma.vmem_to_hbm [thread:$0]  (%p749_p9), %s690_s27, 128, %s688_s6, %s226_s5  }
  0xcc PF: > { %s254_s20 = sand.u32 1, %s504_s12   ;;  %p750_p7 = scmp.ne.s32.totalorder %s745_s26, 0 }
  0xcd   : > { %p751_p13 = scmp.ge.s32.totalorder %s524_s16, 2  ;;  %s255_s21 = scalar_lea.sflag [#allocation6], %s254_s20 }
  0xcf   : > { %p352_p3 = pnand %p751_p13, %p750_p7 }
  0xd1   : > { %499 = dma.done.wait (!%p352_p3), %s255_s21, 128  }
  0xd2   : > { %501 = vsyncadd (!%p352_p3), %s255_s21, 4294967168  ;;  %s20_s16 = sadd.s32 1, %s524_s16   ;;  %s752_s12 = smov %s508_s13 }
  0xd3   : > { %p17_p6 = scmp.ge.s32.totalorder %s20_s16, 4   ;;  %s753_s13 = smov %s512_s14 }
  0xd4   : > { %s754_s14 = smov %s611_s25  ;;  %s755_s0 = smov %s520_s15 }
  0xd5   : > { %s756_s15 = smov %s758_s19  ;;  %19 = sbr.rel (!%p17_p6) target bundleno = 6 (0x6), region = 73 }
  0xdc   :  { %260 = vsyncpa [#allocation5], 1 }
  0xdd   :  { %262 = vsyncpa [#allocation5 + $0x1], 1 }
  0xde   :  { %263 = vsyncpa [#allocation6], 1 }
  0xdf   :  { %265 = vsyncpa [#allocation6 + $0x1], 1 }

</bundles_post_ra>
